<compile_context>
chip_gen: v5e
topology: v5e:2x2
jax: 0.10.0
libtpu: 0.0.40
codegen_flags: <defaults>
</compile_context>

<pallas_src>
import jax
import jax.numpy as jnp
from jax.experimental import pallas as pl
from jax.experimental.pallas import tpu as pltpu

LANES = 128      # vreg lane width
SUBLANES = 8     # vreg sublane count (f32)


def linear_kernel(w_ref, b_ref, x_ref, o_ref):
    # w_ref, b_ref: (1, 1) scalars in SMEM; x_ref/o_ref: (tile_rows, 128) VMEM.
    w = w_ref[0, 0]
    b = b_ref[0, 0]
    # Pure VPU fused multiply-add; scalar broadcast is free.
    o_ref[...] = (x_ref[...] * w + b).astype(o_ref.dtype)


def _padded_geometry(n, tile_rows):
    rows = -(-n // LANES)                                # ceil(N / 128)
    rows_aligned = -(-rows // SUBLANES) * SUBLANES       # multiple of 8
    tr = min(tile_rows, rows_aligned)                    # tile rows (mult of 8)
    rows_padded = -(-rows_aligned // tr) * tr            # multiple of the tile
    return tr, rows_padded


def linear_forward(x, w, b, tile_rows=512):
    """x: (N, 1) f32, w: (1, 1), b: (1,). Returns (N, 1) = x @ w.T + b."""
    N, in_f = x.shape
    assert in_f == 1 and w.shape == (1, 1) and b.shape == (1,)
    assert tile_rows % SUBLANES == 0

    tr, rows_padded = _padded_geometry(N, tile_rows)
    n_padded = rows_padded * LANES

    @jax.jit
    def _run(x, w, b):
        # Lane-dense re-tiling: (N, 1) -> (rows_padded, 128), zero padded.
        x2 = jnp.pad(x.reshape(-1), (0, n_padded - N)).reshape(rows_padded, LANES)
        w_s = w.reshape(1, 1).astype(x.dtype)
        b_s = b.reshape(1, 1).astype(x.dtype)

        y2 = pl.pallas_call(
            linear_kernel,
            out_shape=jax.ShapeDtypeStruct((rows_padded, LANES), x.dtype),
            grid_spec=pltpu.PrefetchScalarGridSpec(
                num_scalar_prefetch=0,
                grid=(rows_padded // tr,),
                in_specs=[
                    pl.BlockSpec(memory_space=pltpu.MemorySpace.SMEM),  # w
                    pl.BlockSpec(memory_space=pltpu.MemorySpace.SMEM),  # b
                    pl.BlockSpec((tr, LANES), lambda i: (i, 0)),        # x tiles
                ],
                out_specs=pl.BlockSpec((tr, LANES), lambda i: (i, 0)),  # y tiles
            ),
            compiler_params=pltpu.CompilerParams(
                # No cross-iteration carry: embarrassingly parallel row tiles.
                dimension_semantics=("parallel",),
            ),
        )(w_s, b_s, x2)

        # Undo padding / lane-dense reshape outside the kernel.
        return y2.reshape(-1)[:N].reshape(N, 1)

    return _run(x, w, b)


if __name__ == "__main__":
    key = jax.random.PRNGKey(0)
    kx, kw, kb = jax.random.split(key, 3)

    # nn.Linear(1, 1): weight (1, 1), bias (1,); input x is (N, 1).
    N = 200
    x = jax.random.normal(kx, (N, 1), dtype=jnp.float32)
    w = jax.random.normal(kw, (1, 1), dtype=jnp.float32) * 0.5
    b = jax.random.normal(kb, (1,), dtype=jnp.float32) * 0.1

    y = linear_forward(x, w, b)
    jax.block_until_ready(y)

    # Reference check in plain JAX.
    y_ref = x @ w.T + b
    assert y.shape == y_ref.shape, "shape mismatch vs reference"
    assert jnp.allclose(y, y_ref, atol=1e-5), "mismatch vs reference"
    print("KERNEL_OK")
</pallas_src>

<mosaic_0001>
module attributes {stable_mosaic.version = 11 : i64} {
  func.func @linear_kernel(%arg0: i32, %arg1: memref<1x1xf32, #tpu.memory_space<smem>>, %arg2: memref<1x1xf32, #tpu.memory_space<smem>>, %arg3: memref<8x128xf32, #tpu.memory_space<vmem>>, %arg4: memref<8x128xf32, #tpu.memory_space<vmem>>) attributes {dimension_semantics = [#tpu.dimension_semantics<parallel>], iteration_bounds = array<i64: 1>, scalar_prefetch = 0 : i64, scratch_operands = 0 : i64, tpu.core_type = #tpu.core_type<tc>, window_params = [{transform_indices = @transform_0, window_bounds = array<i64: 1, 1>}, {transform_indices = @transform_1, window_bounds = array<i64: 1, 1>}, {transform_indices = @transform_2, window_bounds = array<i64: 8, 128>}, {transform_indices = @transform_3, window_bounds = array<i64: 8, 128>}]} {
    %c0 = arith.constant 0 : index
    %c0_0 = arith.constant 0 : index
    %0 = memref.load %arg1[%c0, %c0_0] : memref<1x1xf32, #tpu.memory_space<smem>>
    %c0_1 = arith.constant 0 : index
    %c0_2 = arith.constant 0 : index
    %1 = memref.load %arg2[%c0_1, %c0_2] : memref<1x1xf32, #tpu.memory_space<smem>>
    %c0_3 = arith.constant 0 : index
    %c0_4 = arith.constant 0 : index
    %2 = vector.load %arg3[%c0_3, %c0_4] : memref<8x128xf32, #tpu.memory_space<vmem>>, vector<8x128xf32>
    %3 = vector.broadcast %0 : f32 to vector<8x128xf32>
    %4 = arith.mulf %2, %3 : vector<8x128xf32>
    %5 = vector.broadcast %1 : f32 to vector<8x128xf32>
    %6 = arith.addf %4, %5 : vector<8x128xf32>
    %c0_5 = arith.constant 0 : index
    %c0_6 = arith.constant 0 : index
    %7 = vector.load %arg4[%c0_5, %c0_6] : memref<8x128xf32, #tpu.memory_space<vmem>>, vector<8x128xf32>
    tpu.vector_store %arg4[%c0_5, %c0_6], %6 {strides = array<i32>} : memref<8x128xf32, #tpu.memory_space<vmem>>, vector<8x128xf32>,
    return
  }
  func.func @transform_0(%arg0: i32) -> (i32, i32) {
    %c0_i32 = arith.constant 0 : i32
    %c0_i32_0 = arith.constant 0 : i32
    %c0_i32_1 = arith.constant 0 : i32
    return %c0_i32, %c0_i32_0 : i32, i32
  }
  func.func @transform_1(%arg0: i32) -> (i32, i32) {
    %c0_i32 = arith.constant 0 : i32
    %c0_i32_0 = arith.constant 0 : i32
    %c0_i32_1 = arith.constant 0 : i32
    return %c0_i32, %c0_i32_0 : i32, i32
  }
  func.func @transform_2(%arg0: i32) -> (i32, i32) {
    %c0_i32 = arith.constant 0 : i32
    %c0_i32_0 = arith.constant 0 : i32
    return %arg0, %c0_i32 : i32, i32
  }
  func.func @transform_3(%arg0: i32) -> (i32, i32) {
    %c0_i32 = arith.constant 0 : i32
    %c0_i32_0 = arith.constant 0 : i32
    return %arg0, %c0_i32 : i32, i32
  }
}

</mosaic_0001>

<bundles_post_ra>
// kernel: _run.1
= control target key start
LH: loop header
LB: loop body
LE: loop exit
PB: predicated region body
PF: predicated region fallthrough
CT: control target
= control target key end

     0   :  { %s60_s0 = inlined_call_operand.<no memory space> [shape: f32[1,1], index: 0, kind: input, shape index: {}]   ;;  %s61_s1 = inlined_call_operand.<no memory space> [shape: f32[1,1], index: 1, kind: input, shape index: {}]   ;;  %s62_s2 = inlined_call_operand.vmem [shape: f32[8,128], index: 2, kind: input, shape index: {}]   ;;  %s63_s3 = inlined_call_operand.vmem [shape: f32[8,128], index: 3, kind: output, shape index: {}]  }
   0x1   :  { %v18_v0 = vld [vmem:[%s62_s2] sm:$0xff]  ;;  %v19_v1 = vstv %s60_s0  ;;  %v21_v2 = vstv %s61_s1 }
   0x2   :  { %v20_v3 = vmul.f32 %v19_v1, %v18_v0 }
   0x4   :  { %v22_v4 = vadd.f32 %v21_v2, %v20_v3 }
   0x6   :  { %23 = vst [vmem:[%s63_s3] sm:$0xff] %v22_v4 }

</bundles_post_ra>
